<compile_context>
chip_gen: v7x
topology: tpu7x:2x2x1
jax: 0.10.0
libtpu: 0.0.40
codegen_flags: <defaults>
</compile_context>

<pallas_src>
import jax
import jax.numpy as jnp
from jax.experimental import pallas as pl
from jax.experimental.pallas import tpu as pltpu


def _round_up(n, m):
    return ((n + m - 1) // m) * m


def _preprocess_kernel(x_ref, boxes_ref, scores_ref):
    # x_ref:      (1, TN, D)  natural (box-major) layout straight from the model,
    #             columns = [cx, cy, w, h, obj_conf, cls_0 .. cls_{C-1}]
    # boxes_ref:  (1, 4, TN)  lane-dense rows [x1, y1, x2, y2]
    # scores_ref: (1, C, TN)  lane-dense class scores (cls * obj)
    #
    # One in-kernel transpose puts N on the 128-lane axis so every output store
    # is full-width/unmasked.  This is XLU work; the kernel is HBM-bound, so the
    # XLU slot has full slack and this is far cheaper than a wrapper-side
    # transpose (which would cost a full extra HBM read+write of x).
    xt = jnp.transpose(x_ref[0], (1, 0))            # (D, TN)

    xy = xt[0:2, :]                                  # (2, TN)  cx, cy
    wh = xt[2:4, :]                                  # (2, TN)  w, h
    conf = xt[4:5, :]                                # (1, TN)  objectness
    cls = xt[5:, :]                                  # (C, TN)  class scores

    # cxcywh -> xyxy with plain VPU arithmetic (replaces box @ convert_matrix).
    half = 0.5 * wh
    boxes_ref[0, 0:2, :] = (xy - half).astype(boxes_ref.dtype)
    boxes_ref[0, 2:4, :] = (xy + half).astype(boxes_ref.dtype)

    # score *= conf : (1, TN) broadcast along sublanes (cheap).  Math in f32,
    # cast only at the store (bf16 output halves the largest HBM stream).
    scores_ref[0, :, :] = (cls * conf).astype(scores_ref.dtype)


def end2end_preprocess(x, *, tile_n=2048, score_dtype=jnp.bfloat16):
    """Pallas-accelerated pre-NMS step of the End2End / ONNX_TRT7 forward.

    x: (B, N, 5 + C) float32 in the model's natural layout,
       rows [cx, cy, w, h, obj, cls...].
    returns lane-dense plugin inputs:
        boxes_xyxy: (B, 4, N)  float32
        scores:     (B, C, N)  score_dtype (bf16 by default; plugin uses scoreBits=16)

    N is NOT padded: the grid uses pl.cdiv(N, tile) and Pallas masks the ragged
    last block.  At the default tile the double-buffered working set is well
    under the default scoped VMEM on every generation (v5e 16 MiB, v6e/v7x 32
    MiB); raise `vmem_limit_bytes` if you sweep tile_n up to ~8192.
    """
    B, N, D = x.shape
    C = D - 5
    assert C >= 1, "expected at least one class column"

    # Tile over N (a multiple of 128 so blocks are sublane/lane aligned).
    tn = max(128, _round_up(min(tile_n, _round_up(N, 128)), 128))
    grid = (B, pl.cdiv(N, tn))

    boxes, scores = pl.pallas_call(
        _preprocess_kernel,
        out_shape=(
            jax.ShapeDtypeStruct((B, 4, N), x.dtype),
            jax.ShapeDtypeStruct((B, C, N), score_dtype),
        ),
        grid_spec=pltpu.PrefetchScalarGridSpec(
            num_scalar_prefetch=0,
            grid=grid,
            in_specs=[
                pl.BlockSpec((1, tn, D), lambda b, n: (b, n, 0)),
            ],
            out_specs=[
                pl.BlockSpec((1, 4, tn), lambda b, n: (b, 0, n)),
                pl.BlockSpec((1, C, tn), lambda b, n: (b, 0, n)),
            ],
        ),
        compiler_params=pltpu.CompilerParams(
            # Both axes independent -> megacore / v7x dual-TC sharding even at B==1.
            dimension_semantics=("parallel", "parallel")),
    )(x)
    return boxes, scores


class ONNX_TRT7:
    """JAX/Pallas port of the ONNX_TRT7 head (TensorRT BatchedNMS plugin path)."""

    def __init__(self, max_obj=100, iou_thres=0.45, score_thres=0.25):
        self.shareLocation = 1
        self.backgroundLabelId = -1
        self.numClasses = 80          # overwritten from the (static) input shape
        self.topK = 1000
        self.keepTopK = max_obj
        self.scoreThreshold = score_thres
        self.iouThreshold = iou_thres
        self.isNormalized = 0
        self.clipBoxes = 0
        self.scoreBits = 16
        self.caffeSemantics = 1
        self.plugin_version = '1'
        # Kept only as documentation / for reference checking; the kernel folds
        # this matrix into explicit VPU arithmetic.
        self.convert_matrix = jnp.array(
            [[1.0, 0.0, 1.0, 0.0],
             [0.0, 1.0, 0.0, 1.0],
             [-0.5, 0.0, 0.5, 0.0],
             [0.0, -0.5, 0.0, 0.5]], dtype=jnp.float32)

    def __call__(self, x, rng_key):
        # Pallas hot path (score *= conf ; box cxcywh->xyxy), lane-dense outputs.
        boxes_t, scores_t = end2end_preprocess(x)       # (B,4,N) f32, (B,C,N) bf16
        # Static Python int (shapes are static even under jit); no tracer stash.
        self.numClasses = int(scores_t.shape[1])

        # TODO(synk): TRT::BatchedNMSDynamic_TRT is a TensorRT plugin; the
        # reference PyTorch forward returns random placeholder tensors, so we
        # emit deterministic placeholders of the same shapes/dtypes here.
        B = x.shape[0]
        k0, k1, k2, k3 = jax.random.split(rng_key, 4)
        num_det = jax.random.randint(k0, (B, 1), 0, self.keepTopK, dtype=jnp.int32)
        det_boxes = jax.random.normal(k1, (B, self.keepTopK, 4), dtype=jnp.float32)
        det_scores = jax.random.normal(k2, (B, self.keepTopK), dtype=jnp.float32)
        det_classes = jax.random.randint(
            k3, (B, self.keepTopK), 0, self.numClasses, dtype=jnp.int32)
        return num_det, det_boxes, det_scores, det_classes


class End2End:
    """JAX port of the End2End export wrapper (model -> NMS head)."""

    def __init__(self, model, max_obj=100, iou_thres=0.45, score_thres=0.25,
                 ort=False, trt_version=7, with_preprocess=False):
        self.with_preprocess = with_preprocess
        self.model = model
        # TODO(synk): only the TRT7-style head is ported with the Pallas
        # preprocess; the ORT / TRT8 variants share the same hot path and the
        # same placeholder NMS, so they are not separately implemented.
        self.end2end = ONNX_TRT7(max_obj, iou_thres, score_thres)

    def __call__(self, x, rng_key):
        if self.with_preprocess:
            x = x[:, ::-1, ...] * (1.0 / 255.0)   # BGR->RGB + scale on (B,3,H,W)
        x = self.model(x)
        if isinstance(x, (list, tuple)):
            x = x[0]
        return self.end2end(x, rng_key)


if __name__ == "__main__":
    key = jax.random.PRNGKey(0)
    kx, knms = jax.random.split(key)

    # Small demo shapes: batch=2, 1000 boxes (not a multiple of 128 -> exercises
    # the ragged last block / masked stores), 16 classes -> D = 21.
    B, N, C = 2, 1000, 16
    x = jax.random.uniform(kx, (B, N, 5 + C), dtype=jnp.float32)

    # The backbone "model" is external to this head; use identity for the demo.
    model = End2End(model=lambda t: t, max_obj=100, iou_thres=0.45,
                    score_thres=0.25, trt_version=7, with_preprocess=False)

    num_det, det_boxes, det_scores, det_classes = model(x, knms)
    jax.block_until_ready((num_det, det_boxes, det_scores, det_classes))

    # Verify the Pallas-computed hot path against a pure-JAX reference.
    # Small tile so the grid has several steps plus a ragged tail block.
    got_boxes, got_scores = end2end_preprocess(x, tile_n=256)
    jax.block_until_ready((got_boxes, got_scores))

    ref_boxes = jnp.einsum("bnd,de->bne", x[:, :, :4],
                           model.end2end.convert_matrix)          # (B, N, 4)
    ref_scores = x[:, :, 5:] * x[:, :, 4:5]                        # (B, N, C)

    assert got_boxes.shape == (B, 4, N) and got_boxes.dtype == jnp.float32
    assert got_scores.shape == (B, C, N) and got_scores.dtype == jnp.bfloat16
    assert jnp.allclose(got_boxes, jnp.transpose(ref_boxes, (0, 2, 1)), atol=1e-5)
    assert jnp.allclose(got_scores.astype(jnp.float32),
                        jnp.transpose(ref_scores, (0, 2, 1)), atol=1e-2)

    # Placeholder NMS outputs: check shapes/dtypes match the reference plugin.
    assert num_det.shape == (B, 1) and num_det.dtype == jnp.int32
    assert det_boxes.shape == (B, 100, 4)
    assert det_scores.shape == (B, 100)
    assert det_classes.shape == (B, 100) and det_classes.dtype == jnp.int32

    print("KERNEL_OK")
</pallas_src>

<mosaic_0001>
module attributes {stable_mosaic.version = 11 : i64} {
  func.func @_preprocess_kernel(%arg0: i32, %arg1: i32, %arg2: memref<1x1024x21xf32, #tpu.memory_space<vmem>>, %arg3: memref<1x4x1024xf32, #tpu.memory_space<vmem>>, %arg4: memref<1x16x1024xbf16, #tpu.memory_space<vmem>>) attributes {dimension_semantics = [#tpu.dimension_semantics<parallel>, #tpu.dimension_semantics<parallel>], iteration_bounds = array<i64: 2, 1>, scalar_prefetch = 0 : i64, scratch_operands = 0 : i64, tpu.core_type = #tpu.core_type<tc>, window_params = [{transform_indices = @transform_0, window_bounds = array<i64: 1, 1024, 21>}, {transform_indices = @transform_1, window_bounds = array<i64: 1, 4, 1024>}, {transform_indices = @transform_2, window_bounds = array<i64: 1, 16, 1024>}]} {
    %c0 = arith.constant 0 : index
    %c0_0 = arith.constant 0 : index
    %c0_1 = arith.constant 0 : index
    %0 = vector.load %arg2[%c0, %c0_0, %c0_1] : memref<1x1024x21xf32, #tpu.memory_space<vmem>>, vector<1x1024x21xf32>
    %1 = vector.shape_cast %0 : vector<1x1024x21xf32> to vector<1024x21xf32>
    %2 = tpu.transpose %1, [1, 0] : vector<1024x21xf32> -> vector<21x1024xf32>
    %3 = vector.extract_strided_slice %2 {offsets = [0, 0], sizes = [2, 1024], strides = [1, 1]} : vector<21x1024xf32> to vector<2x1024xf32>
    %4 = vector.extract_strided_slice %2 {offsets = [2, 0], sizes = [2, 1024], strides = [1, 1]} : vector<21x1024xf32> to vector<2x1024xf32>
    %5 = vector.extract_strided_slice %2 {offsets = [4, 0], sizes = [1, 1024], strides = [1, 1]} : vector<21x1024xf32> to vector<1x1024xf32>
    %6 = vector.extract_strided_slice %2 {offsets = [5, 0], sizes = [16, 1024], strides = [1, 1]} : vector<21x1024xf32> to vector<16x1024xf32>
    %cst = arith.constant 5.000000e-01 : f32
    %7 = vector.broadcast %cst : f32 to vector<2x1024xf32>
    %8 = arith.mulf %7, %4 : vector<2x1024xf32>
    %9 = arith.subf %3, %8 : vector<2x1024xf32>
    %c0_2 = arith.constant 0 : index
    %c0_3 = arith.constant 0 : index
    %c0_4 = arith.constant 0 : index
    %10 = vector.load %arg3[%c0_2, %c0_3, %c0_4] : memref<1x4x1024xf32, #tpu.memory_space<vmem>>, vector<1x2x1024xf32>
    %11 = vector.shape_cast %10 : vector<1x2x1024xf32> to vector<2x1024xf32>
    %12 = vector.shape_cast %9 : vector<2x1024xf32> to vector<1x2x1024xf32>
    tpu.vector_store %arg3[%c0_2, %c0_3, %c0_4], %12 {strides = array<i32>} : memref<1x4x1024xf32, #tpu.memory_space<vmem>>, vector<1x2x1024xf32>,
    %13 = arith.addf %3, %8 : vector<2x1024xf32>
    %c0_5 = arith.constant 0 : index
    %c2 = arith.constant 2 : index
    %c0_6 = arith.constant 0 : index
    %14 = vector.load %arg3[%c0_5, %c2, %c0_6] : memref<1x4x1024xf32, #tpu.memory_space<vmem>>, vector<1x2x1024xf32>
    %15 = vector.shape_cast %14 : vector<1x2x1024xf32> to vector<2x1024xf32>
    %16 = vector.shape_cast %13 : vector<2x1024xf32> to vector<1x2x1024xf32>
    tpu.vector_store %arg3[%c0_5, %c2, %c0_6], %16 {strides = array<i32>} : memref<1x4x1024xf32, #tpu.memory_space<vmem>>, vector<1x2x1024xf32>,
    %17 = vector.broadcast %5 : vector<1x1024xf32> to vector<16x1024xf32>
    %18 = arith.mulf %6, %17 : vector<16x1024xf32>
    %19 = arith.truncf %18 : vector<16x1024xf32> to vector<16x1024xbf16>
    %c0_7 = arith.constant 0 : index
    %c0_8 = arith.constant 0 : index
    %c0_9 = arith.constant 0 : index
    %20 = vector.load %arg4[%c0_7, %c0_8, %c0_9] : memref<1x16x1024xbf16, #tpu.memory_space<vmem>>, vector<1x16x1024xbf16>
    %21 = vector.shape_cast %20 : vector<1x16x1024xbf16> to vector<16x1024xbf16>
    %22 = vector.shape_cast %19 : vector<16x1024xbf16> to vector<1x16x1024xbf16>
    tpu.vector_store %arg4[%c0_7, %c0_8, %c0_9], %22 {strides = array<i32>} : memref<1x16x1024xbf16, #tpu.memory_space<vmem>>, vector<1x16x1024xbf16>,
    return
  }
  func.func @transform_0(%arg0: i32, %arg1: i32) -> (i32, i32, i32) {
    %c0_i32 = arith.constant 0 : i32
    %c0_i32_0 = arith.constant 0 : i32
    return %arg0, %arg1, %c0_i32 : i32, i32, i32
  }
  func.func @transform_1(%arg0: i32, %arg1: i32) -> (i32, i32, i32) {
    %c0_i32 = arith.constant 0 : i32
    %c0_i32_0 = arith.constant 0 : i32
    return %arg0, %c0_i32, %arg1 : i32, i32, i32
  }
  func.func @transform_2(%arg0: i32, %arg1: i32) -> (i32, i32, i32) {
    %c0_i32 = arith.constant 0 : i32
    %c0_i32_0 = arith.constant 0 : i32
    return %arg0, %c0_i32, %arg1 : i32, i32, i32
  }
}

</mosaic_0001>

<bundles_post_ra>
// kernel: tpu_custom_call.1
= control target key start
LH: loop header
LB: loop body
LE: loop exit
PB: predicated region body
PF: predicated region fallthrough
CT: control target
= control target key end

     0   :  { %8 = vsyncpa [#allocation3], 0  ;;  %s1648_s0 = inlined_call_operand.vmem [shape: f32[2,1000,21], index: 0, kind: input, shape index: {}]   ;;  %s1649_s1 = inlined_call_operand.hbm [shape: f32[2,4,1000], index: 1, kind: output, shape index: {0}]   ;;  %s1650_s2 = inlined_call_operand.hbm [shape: bf16[2,16,1000], index: 2, kind: output, shape index: {1}]  }
   0x1   :  { %10 = vsyncpa [#allocation3 + $0x1], 0 }
   0x2   :  { %11 = vsyncpa [#allocation5], 0 }
   0x3   :  { %13 = vsyncpa [#allocation5 + $0x1], 0  ;;  %s1315_s9 = smov 0   ;;  %s1317_s10 = smov 0  }
   0x4   :  { %s1319_s11 = smov 0   ;;  %s1321_s12 = smov 0  }
   0x5   :  { %s1323_s13 = smov 0   ;;  %s1325_s14 = smov 0  }
   0x6 LB: > { %s1079_s15 = sadd.s32 4294967295, %s1294_s14   ;;  %s1080_s16 = sadd.s32 4294967294, %s1294_s14   ;;  %s1294_s14 = sphi %s1325_s14, %s19_s14   ;;  %s1290_s13 = sphi %s1323_s13, %s1659_s13   ;;  %s1286_s12 = sphi %s1321_s12, %s1658_s12   ;;  %s1282_s11 = sphi %s1319_s11, %s1657_s11   ;;  %s1278_s10 = sphi %s1317_s10, %s1656_s10   ;;  %s1274_s9 = sphi %s1315_s9, %s1655_s9  }
   0x7   : > { %s31_s17 = sadd.s32 1, %s1290_s13  ;;  %s68_s18 = sadd.s32 1, %s1282_s11 }
   0x8   : > { %p33_p0 = scmp.ge.s32.totalorder %s31_s17, 2  ;;  %p78_p1 = scmp.ne.s32.totalorder %s1282_s11, %s1278_s10 }
   0x9   : > { %p79_p2 = scmp.eq.s32.totalorder %s1079_s15, 1  ;;  %p84_p3 = scmp.ne.s32.totalorder %s1278_s10, %s1274_s9 }
   0xa   : > { %s1661_s17 = smov (%p33_p0, %s31_s17), 0  ;;  %p85_p5 = scmp.eq.s32.totalorder %s1080_s16, 1 }
   0xb   : > { %p1355_p4 = por %p79_p2, %p78_p1  ;;  %s63_s20 = ssub.s32 %s1290_s13, %s1661_s17 }
   0xc   : > { %p1083_p6 = scmp.ge.s32.totalorder %s1294_s14, 1  ;;  %p66_p7 = scmp.eq.s32.totalorder %s63_s20, 0 }
   0xd   : > { %p1362_p8 = por %p85_p5, %p84_p3  ;;  %p148_p9 = scmp.lt.s32.totalorder %s1294_s14, 3 }
   0xe   : > { %s1368_s22 = scalar_select %p66_p7, %s1282_s11, %s68_s18  }
   0xf   : > { %p149_p10 = pnand %p1083_p6, %p148_p9 }
  0x10   : > { %p184_p11 = scmp.lt.s32.totalorder (!%p149_p10), %s1286_s12, 1  ;;  %s1444_s28 = sand.u32 (!%p149_p10), 1, %s1278_s10   ;;  %vm797_vm0 = vsmask.f32 (!%p149_p10), 1280  ;;  %vm798_vm1 = vsmask.f32 (!%p149_p10), 5392 }
  0x11   : > { %152 = sbr.rel (%p149_p10) target bundleno = 402 (0x192), region = 24  ;;  %s1084_s29 = sshll.u32 (!%p149_p10), %s1444_s28, 5  ;;  %vm1466_vm2 = vmor (!%p149_p10), %vm797_vm0, %vm798_vm1 }
  0x12   : > { %s1457_s30 = scalar_lea.vmem (!%p149_p10), [#allocation2], %s1084_s29  ;;  %s1085_s3 = sshll.u32 (!%p149_p10), %s1444_s28, 6 }
  0x13   : > { %s1474_s4 = scalar_lea.vmem (!%p149_p10), [#allocation4], %s1085_s3  ;;  %s1119_s5 = sshll.u32 (!%p149_p10), %s1286_s12, 9 }
  0x14   : > { %s950_s6 = sshll.u32 (!%p149_p10), %s1457_s30, 4  ;;  %s1560_s15 = scalar_lea.hbm (!%p149_p10), %s1649_s1, %s1119_s5  ;;  %s1562_s6 = int_to_ptr.vmem [resolvable:$true] %s950_s6 }
  0x15   : > { %s929_s16 = scalar_lea.sflag (!%p149_p10), [#allocation3], %s1444_s28  ;;  %s1184_s18 = scalar_lea.vmem (!%p149_p10), %s1562_s6, 512 }
  0x16   : > { %p1185_p12 = scmp.ne.s32.totalorder (!%p149_p10), %s1562_s6, %s1184_s18  ;;  %s1296_s20 = smov (!%p149_p10), [#allocation2]  }
  0x18   : > { %s185_s23 = scalar_select %p184_p11, %s1286_s12, 1 }
  0x19   : > { %p1186_p13 = pnand %p1185_p12, %p1355_p4 }
  0x1a   : > { %s1121_s24 = smul.u32 1000, %s185_s23  ;;  %s1188_s23 = sshll.u32 %s1296_s20, 4  ;;  %s1189_s23 = int_to_ptr.vmem [resolvable:$false] %s1188_s23 }
  0x1b   : > { %p1187_p0 = pneg %p1186_p13  ;;  %p1191_p1 = scmp.lt.s32.totalorder %s1562_s6, %s1189_s23 }
  0x1c   : > { %s1375_s27 = scalar_lea.vmem %s1648_s0, %s1121_s24  ;;  %s1190_s24 = scalar_lea.vmem %s1189_s23, 1024 }
  0x1d   : > { %v213_v0 = vld [vmem:[%s1375_s27 + $0x80] sm:$0xff]  ;;  %v214_v2 = vld [vmem:[%s1375_s27 + $0x88] sm:$0xff]  ;;  %v215_v4 = vld [vmem:[%s1375_s27 + $0x90] sm:$0xff]  ;;  %p1192_p2 = scmp.lt.s32.totalorder %s1190_s24, %s1184_s18 }
  0x1e   : > { %v197_v1 = vld [vmem:[%s1375_s27] sm:$0xff]  ;;  %357 = vxpose.xlu1.b32.start [1/16] (narrow) %v213_v0, 24  ;;  %v198_v3 = vld [vmem:[%s1375_s27 + $0x8] sm:$0xff]  ;;  %v199_v5 = vld [vmem:[%s1375_s27 + $0x10] sm:$0xff]  ;;  %v673_v0 = vlaneseq }
  0x1f   : > { %325 = vxpose.xlu0.b32.start [1/16] (narrow) %v197_v1, 24  ;;  %v216_v6 = vld [vmem:[%s1375_s27 + $0x98] sm:$0xff]  ;;  %v217_v8 = vld [vmem:[%s1375_s27 + $0xa0] sm:$0xff]  ;;  %v218_v10 = vld [vmem:[%s1375_s27 + $0xa8] sm:$0xff]  ;;  %p1193_p3 = por %p1192_p2, %p1191_p1 }
  0x20   : > { %v200_v7 = vld [vmem:[%s1375_s27 + $0x18] sm:$0xff]  ;;  %v201_v9 = vld [vmem:[%s1375_s27 + $0x20] sm:$0xff]  ;;  %v202_v11 = vld [vmem:[%s1375_s27 + $0x28] sm:$0xff] }
  0x21   : > { %v219_v12 = vld [vmem:[%s1375_s27 + $0xb0] sm:$0xff]  ;;  %v220_v14 = vld [vmem:[%s1375_s27 + $0xb8] sm:$0xff]  ;;  %v221_v16 = vld [vmem:[%s1375_s27 + $0xc0] sm:$0xff]  ;;  %p1194_p5 = pnand %p1193_p3, %p1187_p0 }
  0x22   : > { %358 = vxpose.xlu1.b32.cont [2/16] (narrow) %v214_v2, 24  ;;  %v203_v13 = vld [vmem:[%s1375_s27 + $0x30] sm:$0xff]  ;;  %v204_v15 = vld [vmem:[%s1375_s27 + $0x38] sm:$0xff]  ;;  %v205_v17 = vld [vmem:[%s1375_s27 + $0x40] sm:$0xff] }
  0x23   : > { %326 = vxpose.xlu0.b32.cont [2/16] (narrow) %v198_v3, 24  ;;  %v222_v18 = vld [vmem:[%s1375_s27 + $0xc8] sm:$0xff]  ;;  %v223_v20 = vld [vmem:[%s1375_s27 + $0xd0] sm:$0xff]  ;;  %v224_v22 = vld [vmem:[%s1375_s27 + $0xd8] sm:$0xff]  ;;  %v674_v3 = vshrl.u32 %v673_v0, 7 }
  0x24   : > { %v206_v19 = vld [vmem:[%s1375_s27 + $0x48] sm:$0xff]  ;;  %v207_v21 = vld [vmem:[%s1375_s27 + $0x50] sm:$0xff]  ;;  %v208_v23 = vld [vmem:[%s1375_s27 + $0x58] sm:$0xff] }
  0x25   : > { %v225_v24 = vld [vmem:[%s1375_s27 + $0xe0] sm:$0xff]  ;;  %v226_v26 = vld [vmem:[%s1375_s27 + $0xe8] sm:$0xff]  ;;  %v227_v28 = vld [vmem:[%s1375_s27 + $0xf0] sm:$0xff] }
  0x26   : > { %359 = vxpose.xlu1.b32.cont [3/16] (narrow) %v215_v4, 24  ;;  %v209_v25 = vld [vmem:[%s1375_s27 + $0x60] sm:$0xff]  ;;  %v210_v27 = vld [vmem:[%s1375_s27 + $0x68] sm:$0xff]  ;;  %v211_v29 = vld [vmem:[%s1375_s27 + $0x70] sm:$0xff] }
  0x27   : > { %327 = vxpose.xlu0.b32.cont [3/16] (narrow) %v199_v5, 24  ;;  %v228_v30 = vld [vmem:[%s1375_s27 + $0xf8] sm:$0xff]  ;;  %v245_v32 = vld [vmem:[%s1375_s27 + $0x180] sm:$0xff]  ;;  %v246_v34 = vld [vmem:[%s1375_s27 + $0x188] sm:$0xff] }
  0x28   : > { %v212_v31 = vld [vmem:[%s1375_s27 + $0x78] sm:$0xff]  ;;  %v229_v33 = vld [vmem:[%s1375_s27 + $0x100] sm:$0xff]  ;;  %v230_v35 = vld [vmem:[%s1375_s27 + $0x108] sm:$0xff] }
  0x29   : > { %v247_v36 = vld [vmem:[%s1375_s27 + $0x190] sm:$0xff]  ;;  %v248_v38 = vld [vmem:[%s1375_s27 + $0x198] sm:$0xff]  ;;  %v249_v40 = vld [vmem:[%s1375_s27 + $0x1a0] sm:$0xff] }
  0x2a   : > { %360 = vxpose.xlu1.b32.cont [4/16] (narrow) %v216_v6, 24  ;;  %v231_v37 = vld [vmem:[%s1375_s27 + $0x110] sm:$0xff]  ;;  %v232_v39 = vld [vmem:[%s1375_s27 + $0x118] sm:$0xff]  ;;  %v233_v41 = vld [vmem:[%s1375_s27 + $0x120] sm:$0xff]  ;;  %v1446_v6 = vsub.s32 4, %v674_v3 }
  0x2b   : > { %328 = vxpose.xlu0.b32.cont [4/16] (narrow) %v200_v7, 24  ;;  %v250_v42 = vld [vmem:[%s1375_s27 + $0x1a8] sm:$0xff]  ;;  %v251_v44 = vld [vmem:[%s1375_s27 + $0x1b0] sm:$0xff]  ;;  %v252_v46 = vld [vmem:[%s1375_s27 + $0x1b8] sm:$0xff] }
  0x2c   : > { %v234_v43 = vld [vmem:[%s1375_s27 + $0x128] sm:$0xff]  ;;  %v235_v45 = vld [vmem:[%s1375_s27 + $0x130] sm:$0xff]  ;;  %v236_v47 = vld [vmem:[%s1375_s27 + $0x138] sm:$0xff] }
  0x2d   : > { %v253_v48 = vld [vmem:[%s1375_s27 + $0x1c0] sm:$0xff]  ;;  %v254_v50 = vld [vmem:[%s1375_s27 + $0x1c8] sm:$0xff]  ;;  %v255_v52 = vld [vmem:[%s1375_s27 + $0x1d0] sm:$0xff] }
  0x2e   : > { %361 = vxpose.xlu1.b32.cont [5/16] (narrow) %v217_v8, 24  ;;  %v237_v49 = vld [vmem:[%s1375_s27 + $0x140] sm:$0xff]  ;;  %v238_v51 = vld [vmem:[%s1375_s27 + $0x148] sm:$0xff]  ;;  %v239_v53 = vld [vmem:[%s1375_s27 + $0x150] sm:$0xff] }
  0x2f   : > { %329 = vxpose.xlu0.b32.cont [5/16] (narrow) %v201_v9, 24  ;;  %v256_v54 = vld [vmem:[%s1375_s27 + $0x1d8] sm:$0xff]  ;;  %v257_v56 = vld [vmem:[%s1375_s27 + $0x1e0] sm:$0xff]  ;;  %v258_v58 = vld [vmem:[%s1375_s27 + $0x1e8] sm:$0xff] }
  0x30   : > { %v240_v55 = vld [vmem:[%s1375_s27 + $0x158] sm:$0xff]  ;;  %v241_v57 = vld [vmem:[%s1375_s27 + $0x160] sm:$0xff]  ;;  %v242_v59 = vld [vmem:[%s1375_s27 + $0x168] sm:$0xff] }
  0x31   : > { %v259_v60 = vld [vmem:[%s1375_s27 + $0x1f0] sm:$0xff]  ;;  %v260_v62 = vld [vmem:[%s1375_s27 + $0x1f8] sm:$0xff]  ;;  %v277_v1 = vld [vmem:[%s1375_s27 + $0x280] sm:$0xff] }
  0x32   : > { %362 = vxpose.xlu1.b32.cont [6/16] (narrow) %v218_v10, 24  ;;  %v243_v61 = vld [vmem:[%s1375_s27 + $0x170] sm:$0xff]  ;;  %v244_v63 = vld [vmem:[%s1375_s27 + $0x178] sm:$0xff]  ;;  %v261_v2 = vld [vmem:[%s1375_s27 + $0x200] sm:$0xff] }
  0x33   : > { %330 = vxpose.xlu0.b32.cont [6/16] (narrow) %v202_v11, 24  ;;  %v278_v7 = vld [vmem:[%s1375_s27 + $0x288] sm:$0xff]  ;;  %v267_v0 = vld [vmem:[%s1375_s27 + $0x230] sm:$0xff]  ;;  %v285_v3 = vld [vmem:[%s1375_s27 + $0x2c0] sm:$0xff] }
  0x34   : > { %v262_v8 = vld [vmem:[%s1375_s27 + $0x208] sm:$0xff] }
  0x36   : > { %363 = vxpose.xlu1.b32.cont [7/16] (narrow) %v219_v12, 24 }
  0x37   : > { %331 = vxpose.xlu0.b32.cont [7/16] (narrow) %v203_v13, 24 }
  0x3a   : > { %364 = vxpose.xlu1.b32.cont [8/16] (narrow) %v220_v14, 24 }
  0x3b   : > { %332 = vxpose.xlu0.b32.cont [8/16] (narrow) %v204_v15, 24 }
  0x3e   : > { %365 = vxpose.xlu1.b32.cont [9/16] (narrow) %v221_v16, 24 }
  0x3f   : > { %333 = vxpose.xlu0.b32.cont [9/16] (narrow) %v205_v17, 24 }
  0x42   : > { %366 = vxpose.xlu1.b32.cont [10/16] (narrow) %v222_v18, 24 }
  0x43   : > { %334 = vxpose.xlu0.b32.cont [10/16] (narrow) %v206_v19, 24  ;;  %v279_v19 = vld [vmem:[%s1375_s27 + $0x290] sm:$0xff] }
  0x46   : > { %367 = vxpose.xlu1.b32.cont [11/16] (narrow) %v223_v20, 24  ;;  %v263_v20 = vld [vmem:[%s1375_s27 + $0x210] sm:$0xff] }
  0x47   : > { %335 = vxpose.xlu0.b32.cont [11/16] (narrow) %v207_v21, 24 }
  0x4a   : > { %368 = vxpose.xlu1.b32.cont [12/16] (narrow) %v224_v22, 24 }
  0x4b   : > { %336 = vxpose.xlu0.b32.cont [12/16] (narrow) %v208_v23, 24 }
  0x4e   : > { %369 = vxpose.xlu1.b32.cont [13/16] (narrow) %v225_v24, 24 }
  0x4f   : > { %337 = vxpose.xlu0.b32.cont [13/16] (narrow) %v209_v25, 24 }
  0x52   : > { %370 = vxpose.xlu1.b32.cont [14/16] (narrow) %v226_v26, 24 }
  0x53   : > { %338 = vxpose.xlu0.b32.cont [14/16] (narrow) %v210_v27, 24 }
  0x56   : > { %371 = vxpose.xlu1.b32.cont [15/16] (narrow) %v227_v28, 24 }
  0x57   : > { %339 = vxpose.xlu0.b32.cont [15/16] (narrow) %v211_v29, 24 }
  0x5a   : > { %372 = vxpose.xlu1.b32.end [16/16] (narrow) %v228_v30, 24 }
  0x5b   : > { %340 = vxpose.xlu0.b32.end [16/16] (narrow) %v212_v31, 24 }
  0x5e   : > { %421 = vxpose.xlu1.b32.start [1/16] (narrow) %v245_v32, 24 }
  0x5f   : > { %389 = vxpose.xlu0.b32.start [1/16] (narrow) %v229_v33, 24 }
  0x62   : > { %422 = vxpose.xlu1.b32.cont [2/16] (narrow) %v246_v34, 24 }
  0x63   : > { %390 = vxpose.xlu0.b32.cont [2/16] (narrow) %v230_v35, 24  ;;  %v280_v35 = vld [vmem:[%s1375_s27 + $0x298] sm:$0xff] }
  0x66   : > { %423 = vxpose.xlu1.b32.cont [3/16] (narrow) %v247_v36, 24  ;;  %v264_v36 = vld [vmem:[%s1375_s27 + $0x218] sm:$0xff] }
  0x67   : > { %391 = vxpose.xlu0.b32.cont [3/16] (narrow) %v231_v37, 24 }
  0x6a   : > { %424 = vxpose.xlu1.b32.cont [4/16] (narrow) %v248_v38, 24 }
  0x6b   : > { %392 = vxpose.xlu0.b32.cont [4/16] (narrow) %v232_v39, 24 }
  0x6e   : > { %425 = vxpose.xlu1.b32.cont [5/16] (narrow) %v249_v40, 24 }
  0x6f   : > { %393 = vxpose.xlu0.b32.cont [5/16] (narrow) %v233_v41, 24 }
  0x72   : > { %426 = vxpose.xlu1.b32.cont [6/16] (narrow) %v250_v42, 24 }
  0x73   : > { %394 = vxpose.xlu0.b32.cont [6/16] (narrow) %v234_v43, 24 }
  0x76   : > { %427 = vxpose.xlu1.b32.cont [7/16] (narrow) %v251_v44, 24 }
  0x77   : > { %395 = vxpose.xlu0.b32.cont [7/16] (narrow) %v235_v45, 24 }
  0x7a   : > { %428 = vxpose.xlu1.b32.cont [8/16] (narrow) %v252_v46, 24 }
  0x7b   : > { %396 = vxpose.xlu0.b32.cont [8/16] (narrow) %v236_v47, 24 }
  0x7e   : > { %429 = vxpose.xlu1.b32.cont [9/16] (narrow) %v253_v48, 24  ;;  %v281_v48 = vld [vmem:[%s1375_s27 + $0x2a0] sm:$0xff] }
  0x7f   : > { %397 = vxpose.xlu0.b32.cont [9/16] (narrow) %v237_v49, 24  ;;  %v265_v49 = vld [vmem:[%s1375_s27 + $0x220] sm:$0xff] }
  0x82   : > { %430 = vxpose.xlu1.b32.cont [10/16] (narrow) %v254_v50, 24 }
  0x83   : > { %398 = vxpose.xlu0.b32.cont [10/16] (narrow) %v238_v51, 24 }
  0x86   : > { %431 = vxpose.xlu1.b32.cont [11/16] (narrow) %v255_v52, 24 }
  0x87   : > { %399 = vxpose.xlu0.b32.cont [11/16] (narrow) %v239_v53, 24 }
  0x8a   : > { %432 = vxpose.xlu1.b32.cont [12/16] (narrow) %v256_v54, 24 }
  0x8b   : > { %400 = vxpose.xlu0.b32.cont [12/16] (narrow) %v240_v55, 24 }
  0x8e   : > { %433 = vxpose.xlu1.b32.cont [13/16] (narrow) %v257_v56, 24 }
  0x8f   : > { %401 = vxpose.xlu0.b32.cont [13/16] (narrow) %v241_v57, 24 }
  0x92   : > { %434 = vxpose.xlu1.b32.cont [14/16] (narrow) %v258_v58, 24 }
  0x93   : > { %402 = vxpose.xlu0.b32.cont [14/16] (narrow) %v242_v59, 24  ;;  %v282_v59 = vld [vmem:[%s1375_s27 + $0x2a8] sm:$0xff] }
  0x96   : > { %435 = vxpose.xlu1.b32.cont [15/16] (narrow) %v259_v60, 24  ;;  %v266_v60 = vld [vmem:[%s1375_s27 + $0x228] sm:$0xff] }
  0x97   : > { %403 = vxpose.xlu0.b32.cont [15/16] (narrow) %v243_v61, 24 }
  0x9a   : > { %436 = vxpose.xlu1.b32.end [16/16] (narrow) %v260_v62, 24 }
  0x9b   : > { %404 = vxpose.xlu0.b32.end [16/16] (narrow) %v244_v63, 24  ;;  %v283_v63 = vld [vmem:[%s1375_s27 + $0x2b0] sm:$0xff] }
  0x9e   : > { %485 = vxpose.xlu1.b32.start [1/16] (narrow) %v277_v1, 24  ;;  %v373_v4 = vpop.trf.xlu1  ;;  %v284_v1 = vld [vmem:[%s1375_s27 + $0x2b8] sm:$0xff] }
  0x9f   : > { %453 = vxpose.xlu0.b32.start [1/16] (narrow) %v261_v2, 24  ;;  %v341_v5 = vpop.trf.xlu0  ;;  %v582_v9 = vmul.f32 0.5, %v373_v4  ;;  %v680_v11 = vrot.slane %v373_v4, %v1446_v6  ;;  %v268_v2 = vld [vmem:[%s1375_s27 + $0x238] sm:$0xff] }
  0xa0   : > { %v581_v10 = vmul.f32 0.5, %v341_v5  ;;  %v676_v12 = vrot.slane %v341_v5, %v1446_v6 }
  0xa1   : > { %v598_v13 = vrot.slane %v582_v9, 2  ;;  %v706_v15 = vmul.f32 %v680_v11, %v373_v4  ;;  %v271_v9 = vld [vmem:[%s1375_s27 + $0x250] sm:$0xff] }
  0xa2   : > { %v597_v14 = vrot.slane %v581_v10, 2  ;;  %486 = vxpose.xlu1.b32.cont [2/16] (narrow) %v278_v7, 24  ;;  %v374_v16 = vpop.trf.xlu1  ;;  %v705_v17 = vmul.f32 %v676_v12, %v341_v5  ;;  %v270_v7 = vld [vmem:[%s1375_s27 + $0x248] sm:$0xff]  ;;  %v288_v10 = vld [vmem:[%s1375_s27 + $0x2d8] sm:$0xff] }
  0xa3   : > { %454 = vxpose.xlu0.b32.cont [2/16] (narrow) %v262_v8, 24  ;;  %v342_v18 = vpop.trf.xlu0  ;;  %v614_v21 = vsub.f32 %v373_v4, %v598_v13  ;;  %v642_v22 = vadd.f32 %v598_v13, %v373_v4  ;;  %v714_v25 = vmul.f32 %v680_v11, %v374_v16  ;;  %v269_v4 = vld [vmem:[%s1375_s27 + $0x240] sm:$0xff]  ;;  %v287_v8 = vld [vmem:[%s1375_s27 + $0x2d0] sm:$0xff] }
  0xa4   : > { %v613_v23 = vsub.f32 %v341_v5, %v597_v14  ;;  %v641_v24 = vadd.f32 %v597_v14, %v341_v5  ;;  %v1107_v26 = vpack.c.bf16 %v706_v15, %v705_v17  ;;  %v713_v27 = vmul.f32 %v676_v12, %v342_v18  ;;  %v286_v5 = vld [vmem:[%s1375_s27 + $0x2c8] sm:$0xff]  ;;  %v273_v13 = vld [vmem:[%s1375_s27 + $0x260] sm:$0xff]  ;;  %v291_v16 = vld [vmem:[%s1375_s27 + $0x2f0] sm:$0xff] }
  0xa5   : > { %v290_v14 = vld [vmem:[%s1375_s27 + $0x2e8] sm:$0xff]  ;;  %v275_v17 = vld [vmem:[%s1375_s27 + $0x270] sm:$0xff]  ;;  %v292_v18 = vld [vmem:[%s1375_s27 + $0x2f8] sm:$0xff] }
  0xa6   : > { %v629_v28 = vcombine.low %v613_v23, %v614_v21  ;;  %v657_v29 = vcombine.low %v641_v24, %v642_v22  ;;  %487 = vxpose.xlu1.b32.cont [3/16] (narrow) %v279_v19, 24  ;;  %v801_v30 = vshrl.u32 %v1107_v26, 16  ;;  %v804_v31 = vshll.u32 %v1107_v26, 16  ;;  %v375_v33 = vpop.trf.xlu1  ;;  %v274_v15 = vld [vmem:[%s1375_s27 + $0x268] sm:$0xff]  ;;  %v276_v19 = vld [vmem:[%s1375_s27 + $0x278] sm:$0xff]  ;;  %v293_v21 = vld [vmem:[%s1375_s27 + $0x300] sm:$0xff] }
  0xa7   : > { %455 = vxpose.xlu0.b32.cont [3/16] (narrow) %v263_v20, 24  ;;  %v1111_v32 = vpack.c.bf16 %v714_v25, %v713_v27  ;;  %v343_v34 = vpop.trf.xlu0  ;;  %v722_v38 = vmul.f32 %v680_v11, %v375_v33  ;;  %v272_v11 = vld [vmem:[%s1375_s27 + $0x258] sm:$0xff]  ;;  %v309_v20 = vld [vmem:[%s1375_s27 + $0x380] sm:$0xff]  ;;  %v310_v24 = vld [vmem:[%s1375_s27 + $0x388] sm:$0xff] }
  0xa8   : > { %637 = vst [vmem:[%s1457_s30] sm:$0x33] %v629_v28  ;;  %v661_v37 = vrot.slane %v657_v29, 6  ;;  %v721_v39 = vmul.f32 %v676_v12, %v343_v34  ;;  %v803_v40 = vrot.slane %v801_v30, 6  ;;  %v806_v41 = vrot.slane %v804_v31, 7  ;;  %v289_v12 = vld [vmem:[%s1375_s27 + $0x2e0] sm:$0xff]  ;;  %v294_v25 = vld [vmem:[%s1375_s27 + $0x308] sm:$0xff] }
  0xa9   : > { %v810_v42 = vshrl.u32 %v1111_v32, 16  ;;  %v813_v43 = vshll.u32 %v1111_v32, 16 }
  0xaa   : > { %669 = vst [vmem:[%s1457_s30] sm:$0xcc] %v661_v37  ;;  %v1115_v44 = vpack.c.bf16 %v722_v38, %v721_v39  ;;  %488 = vxpose.xlu1.b32.cont [4/16] (narrow) %v280_v35, 24  ;;  %v807_v45 = vor.u32 %v806_v41, %v803_v40  ;;  %v295_v37 = vld [vmem:[%s1375_s27 + $0x310] sm:$0xff] }
  0xab   : > { %456 = vxpose.xlu0.b32.cont [4/16] (narrow) %v264_v36, 24  ;;  %v812_v46 = vrot.slane %v810_v42, 6  ;;  %v815_v47 = vrot.slane %v813_v43, 7  ;;  %v311_v36 = vld [vmem:[%s1375_s27 + $0x390] sm:$0xff] }
  0xac   : > { %v874_v51 = vshrl.u32 %v1115_v44, 16  ;;  %v877_v52 = vshll.u32 %v1115_v44, 16  ;;  %v808_v53 = vrot.slane %v807_v45, 4 }
  0xad   : > { %v816_v54 = vor.u32 %v815_v47, %v812_v46 }
  0xae   : > { %v876_v55 = vrot.slane %v874_v51, 6  ;;  %v879_v56 = vrot.slane %v877_v52, 7  ;;  %489 = vxpose.xlu1.b32.cont [5/16] (narrow) %v281_v48, 24 }
  0xaf   : > { %457 = vxpose.xlu0.b32.cont [5/16] (narrow) %v265_v49, 24  ;;  %v817_v57 = vsel %vm1466_vm2, %v808_v53, %v816_v54  ;;  %v872_v58 = vrot.slane %v816_v54, 4  ;;  %v312_v53 = vld [vmem:[%s1375_s27 + $0x398] sm:$0xff] }
  0xb0   : > { %920 = vst [vmem:[%s1474_s4] sm:$0xff] %v817_v57  ;;  %v880_v61 = vor.u32 %v879_v56, %v876_v55  ;;  %v296_v54 = vld [vmem:[%s1375_s27 + $0x318] sm:$0xff] }
  0xb2   : > { %v881_v62 = vsel %vm1466_vm2, %v872_v58, %v880_v61  ;;  %490 = vxpose.xlu1.b32.cont [6/16] (narrow) %v282_v59, 24 }
  0xb3   : > { %458 = vxpose.xlu0.b32.cont [6/16] (narrow) %v266_v60, 24  ;;  %924 = vst [vmem:[%s1474_s4 + $0x20] sm:$0xff] %v881_v62 }
  0xb6   : > { %491 = vxpose.xlu1.b32.cont [7/16] (narrow) %v283_v63, 24 }
  0xb7   : > { %459 = vxpose.xlu0.b32.cont [7/16] (narrow) %v267_v0, 24 }
  0xba   : > { %492 = vxpose.xlu1.b32.cont [8/16] (narrow) %v284_v1, 24 }
  0xbb   : > { %460 = vxpose.xlu0.b32.cont [8/16] (narrow) %v268_v2, 24  ;;  %v313_v2 = vld [vmem:[%s1375_s27 + $0x3a0] sm:$0xff] }
  0xbe   : > { %493 = vxpose.xlu1.b32.cont [9/16] (narrow) %v285_v3, 24  ;;  %v297_v3 = vld [vmem:[%s1375_s27 + $0x320] sm:$0xff] }
  0xbf   : > { %461 = vxpose.xlu0.b32.cont [9/16] (narrow) %v269_v4, 24 }
  0xc2   : > { %494 = vxpose.xlu1.b32.cont [10/16] (narrow) %v286_v5, 24 }
  0xc3   : > { %462 = vxpose.xlu0.b32.cont [10/16] (narrow) %v270_v7, 24 }
  0xc6   : > { %495 = vxpose.xlu1.b32.cont [11/16] (narrow) %v287_v8, 24 }
  0xc7   : > { %463 = vxpose.xlu0.b32.cont [11/16] (narrow) %v271_v9, 24 }
  0xca   : > { %496 = vxpose.xlu1.b32.cont [12/16] (narrow) %v288_v10, 24 }
  0xcb   : > { %464 = vxpose.xlu0.b32.cont [12/16] (narrow) %v272_v11, 24 }
  0xce   : > { %497 = vxpose.xlu1.b32.cont [13/16] (narrow) %v289_v12, 24 }
  0xcf   : > { %465 = vxpose.xlu0.b32.cont [13/16] (narrow) %v273_v13, 24  ;;  %v314_v13 = vld [vmem:[%s1375_s27 + $0x3a8] sm:$0xff] }
  0xd2   : > { %498 = vxpose.xlu1.b32.cont [14/16] (narrow) %v290_v14, 24  ;;  %v298_v14 = vld [vmem:[%s1375_s27 + $0x328] sm:$0xff] }
  0xd3   : > { %466 = vxpose.xlu0.b32.cont [14/16] (narrow) %v274_v15, 24 }
  0xd6   : > { %499 = vxpose.xlu1.b32.cont [15/16] (narrow) %v291_v16, 24 }
  0xd7   : > { %467 = vxpose.xlu0.b32.cont [15/16] (narrow) %v275_v17, 24  ;;  %v315_v17 = vld [vmem:[%s1375_s27 + $0x3b0] sm:$0xff] }
  0xda   : > { %500 = vxpose.xlu1.b32.end [16/16] (narrow) %v292_v18, 24  ;;  %v299_v18 = vld [vmem:[%s1375_s27 + $0x330] sm:$0xff] }
  0xdb   : > { %468 = vxpose.xlu0.b32.end [16/16] (narrow) %v276_v19, 24  ;;  %v316_v19 = vld [vmem:[%s1375_s27 + $0x3b8] sm:$0xff] }
  0xde   : > { %549 = vxpose.xlu1.b32.start [1/16] (narrow) %v309_v20, 24  ;;  %v437_v22 = vpop.trf.xlu1  ;;  %v300_v20 = vld [vmem:[%s1375_s27 + $0x338] sm:$0xff] }
  0xdf   : > { %517 = vxpose.xlu0.b32.start [1/16] (narrow) %v293_v21, 24  ;;  %v405_v23 = vpop.trf.xlu0  ;;  %v584_v26 = vmul.f32 0.5, %v437_v22  ;;  %v688_v28 = vrot.slane %v437_v22, %v1446_v6  ;;  %v317_v21 = vld [vmem:[%s1375_s27 + $0x3c0] sm:$0xff] }
  0xe0   : > { %v583_v27 = vmul.f32 0.5, %v405_v23  ;;  %v684_v29 = vrot.slane %v405_v23, %v1446_v6 }
  0xe1   : > { %v600_v30 = vrot.slane %v584_v26, 2  ;;  %v708_v32 = vmul.f32 %v688_v28, %v437_v22  ;;  %v303_v26 = vld [vmem:[%s1375_s27 + $0x350] sm:$0xff] }
  0xe2   : > { %v599_v31 = vrot.slane %v583_v27, 2  ;;  %v707_v33 = vmul.f32 %v684_v29, %v405_v23  ;;  %550 = vxpose.xlu1.b32.cont [2/16] (narrow) %v310_v24, 24  ;;  %v438_v34 = vpop.trf.xlu1  ;;  %v302_v24 = vld [vmem:[%s1375_s27 + $0x348] sm:$0xff]  ;;  %v320_v27 = vld [vmem:[%s1375_s27 + $0x3d8] sm:$0xff] }
  0xe3   : > { %518 = vxpose.xlu0.b32.cont [2/16] (narrow) %v294_v25, 24  ;;  %v406_v35 = vpop.trf.xlu0  ;;  %v616_v38 = vsub.f32 %v437_v22, %v600_v30  ;;  %v644_v39 = vadd.f32 %v600_v30, %v437_v22  ;;  %v716_v42 = vmul.f32 %v688_v28, %v438_v34  ;;  %v301_v22 = vld [vmem:[%s1375_s27 + $0x340] sm:$0xff]  ;;  %v319_v25 = vld [vmem:[%s1375_s27 + $0x3d0] sm:$0xff] }
  0xe4   : > { %v615_v40 = vsub.f32 %v405_v23, %v599_v31  ;;  %v643_v41 = vadd.f32 %v599_v31, %v405_v23  ;;  %v1108_v43 = vpack.c.bf16 %v708_v32, %v707_v33  ;;  %v715_v44 = vmul.f32 %v684_v29, %v406_v35  ;;  %v318_v23 = vld [vmem:[%s1375_s27 + $0x3c8] sm:$0xff]  ;;  %v305_v30 = vld [vmem:[%s1375_s27 + $0x360] sm:$0xff]  ;;  %v323_v33 = vld [vmem:[%s1375_s27 + $0x3f0] sm:$0xff] }
  0xe5   : > { %v322_v31 = vld [vmem:[%s1375_s27 + $0x3e8] sm:$0xff]  ;;  %v307_v34 = vld [vmem:[%s1375_s27 + $0x370] sm:$0xff]  ;;  %v324_v35 = vld [vmem:[%s1375_s27 + $0x3f8] sm:$0xff] }
  0xe6   : > { %v630_v45 = vcombine.low %v615_v40, %v616_v38  ;;  %v658_v46 = vcombine.low %v643_v41, %v644_v39  ;;  %551 = vxpose.xlu1.b32.cont [3/16] (narrow) %v311_v36, 24  ;;  %v819_v47 = vshrl.u32 %v1108_v43, 16  ;;  %v822_v48 = vshll.u32 %v1108_v43, 16  ;;  %v439_v51 = vpop.trf.xlu1  ;;  %v306_v32 = vld [vmem:[%s1375_s27 + $0x368] sm:$0xff]  ;;  %v308_v36 = vld [vmem:[%s1375_s27 + $0x378] sm:$0xff] }
  0xe7   : > { %519 = vxpose.xlu0.b32.cont [3/16] (narrow) %v295_v37, 24  ;;  %v1112_v49 = vpack.c.bf16 %v716_v42, %v715_v44  ;;  %v407_v52 = vpop.trf.xlu0  ;;  %v724_v56 = vmul.f32 %v688_v28, %v439_v51  ;;  %v304_v28 = vld [vmem:[%s1375_s27 + $0x358] sm:$0xff] }
  0xe8   : > { %638 = vst [vmem:[%s1457_s30 + $0x8] sm:$0x33] %v630_v45  ;;  %v662_v55 = vrot.slane %v658_v46, 6  ;;  %v723_v57 = vmul.f32 %v684_v29, %v407_v52  ;;  %v821_v58 = vrot.slane %v819_v47, 6  ;;  %v824_v59 = vrot.slane %v822_v48, 7  ;;  %v321_v29 = vld [vmem:[%s1375_s27 + $0x3e0] sm:$0xff] }
  0xe9   : > { %v828_v60 = vshrl.u32 %v1112_v49, 16  ;;  %v831_v61 = vshll.u32 %v1112_v49, 16 }
  0xea   : > { %670 = vst [vmem:[%s1457_s30 + $0x8] sm:$0xcc] %v662_v55  ;;  %v1116_v62 = vpack.c.bf16 %v724_v56, %v723_v57  ;;  %552 = vxpose.xlu1.b32.cont [4/16] (narrow) %v312_v53, 24  ;;  %v825_v63 = vor.u32 %v824_v59, %v821_v58 }
  0xeb   : > { %520 = vxpose.xlu0.b32.cont [4/16] (narrow) %v296_v54, 24  ;;  %v830_v0 = vrot.slane %v828_v60, 6  ;;  %v833_v1 = vrot.slane %v831_v61, 7 }
  0xec   : > { %v884_v4 = vshrl.u32 %v1116_v62, 16  ;;  %v887_v5 = vshll.u32 %v1116_v62, 16  ;;  %v826_v7 = vrot.slane %v825_v63, 4 }
  0xed   : > { %v834_v8 = vor.u32 %v833_v1, %v830_v0 }
  0xee   : > { %v886_v9 = vrot.slane %v884_v4, 6  ;;  %v889_v10 = vrot.slane %v887_v5, 7  ;;  %553 = vxpose.xlu1.b32.cont [5/16] (narrow) %v313_v2, 24 }
  0xef   : > { %521 = vxpose.xlu0.b32.cont [5/16] (narrow) %v297_v3, 24  ;;  %v835_v11 = vsel %vm1466_vm2, %v826_v7, %v834_v8  ;;  %v882_v12 = vrot.slane %v834_v8, 4 }
  0xf0   : > { %921 = vst [vmem:[%s1474_s4 + $0x8] sm:$0xff] %v835_v11  ;;  %v890_v15 = vor.u32 %v889_v10, %v886_v9 }
  0xf2   : > { %v891_v16 = vsel %vm1466_vm2, %v882_v12, %v890_v15  ;;  %554 = vxpose.xlu1.b32.cont [6/16] (narrow) %v314_v13, 24 }
  0xf3   : > { %522 = vxpose.xlu0.b32.cont [6/16] (narrow) %v298_v14, 24  ;;  %925 = vst [vmem:[%s1474_s4 + $0x28] sm:$0xff] %v891_v16 }
  0xf6   : > { %555 = vxpose.xlu1.b32.cont [7/16] (narrow) %v315_v17, 24 }
  0xf7   : > { %523 = vxpose.xlu0.b32.cont [7/16] (narrow) %v299_v18, 24 }
  0xfa   : > { %556 = vxpose.xlu1.b32.cont [8/16] (narrow) %v316_v19, 24 }
  0xfb   : > { %524 = vxpose.xlu0.b32.cont [8/16] (narrow) %v300_v20, 24 }
  0xfe   : > { %557 = vxpose.xlu1.b32.cont [9/16] (narrow) %v317_v21, 24 }
  0xff   : > { %525 = vxpose.xlu0.b32.cont [9/16] (narrow) %v301_v22, 24 }
 0x102   : > { %558 = vxpose.xlu1.b32.cont [10/16] (narrow) %v318_v23, 24 }
 0x103   : > { %526 = vxpose.xlu0.b32.cont [10/16] (narrow) %v302_v24, 24 }
 0x106   : > { %559 = vxpose.xlu1.b32.cont [11/16] (narrow) %v319_v25, 24 }
 0x107   : > { %527 = vxpose.xlu0.b32.cont [11/16] (narrow) %v303_v26, 24 }
 0x10a   : > { %560 = vxpose.xlu1.b32.cont [12/16] (narrow) %v320_v27, 24 }
 0x10b   : > { %528 = vxpose.xlu0.b32.cont [12/16] (narrow) %v304_v28, 24 }
 0x10e   : > { %561 = vxpose.xlu1.b32.cont [13/16] (narrow) %v321_v29, 24 }
 0x10f   : > { %529 = vxpose.xlu0.b32.cont [13/16] (narrow) %v305_v30, 24 }
 0x112   : > { %562 = vxpose.xlu1.b32.cont [14/16] (narrow) %v322_v31, 24 }
 0x113   : > { %530 = vxpose.xlu0.b32.cont [14/16] (narrow) %v306_v32, 24 }
 0x116   : > { %563 = vxpose.xlu1.b32.cont [15/16] (narrow) %v323_v33, 24 }
 0x117   : > { %531 = vxpose.xlu0.b32.cont [15/16] (narrow) %v307_v34, 24 }
 0x11a   : > { %564 = vxpose.xlu1.b32.end [16/16] (narrow) %v324_v35, 24 }
 0x11b   : > { %532 = vxpose.xlu0.b32.end [16/16] (narrow) %v308_v36, 24 }
 0x11e   : > { %v501_v37 = vpop.trf.xlu1 }
 0x11f   : > { %v469_v38 = vpop.trf.xlu0  ;;  %v586_v39 = vmul.f32 0.5, %v501_v37  ;;  %v696_v41 = vrot.slane %v501_v37, %v1446_v6 }
 0x120   : > { %v585_v40 = vmul.f32 0.5, %v469_v38  ;;  %v692_v42 = vrot.slane %v469_v38, %v1446_v6 }
 0x121   : > { %v602_v43 = vrot.slane %v586_v39, 2  ;;  %v710_v45 = vmul.f32 %v696_v41, %v501_v37 }
 0x122   : > { %v601_v44 = vrot.slane %v585_v40, 2  ;;  %v709_v46 = vmul.f32 %v692_v42, %v469_v38  ;;  %v502_v47 = vpop.trf.xlu1 }
 0x123   : > { %v470_v48 = vpop.trf.xlu0  ;;  %v618_v49 = vsub.f32 %v501_v37, %v602_v43  ;;  %v646_v51 = vadd.f32 %v602_v43, %v501_v37  ;;  %v718_v54 = vmul.f32 %v696_v41, %v502_v47 }
 0x124   : > { %v617_v52 = vsub.f32 %v469_v38, %v601_v44  ;;  %v645_v53 = vadd.f32 %v601_v44, %v469_v38  ;;  %v1109_v55 = vpack.c.bf16 %v710_v45, %v709_v46  ;;  %v717_v56 = vmul.f32 %v692_v42, %v470_v48 }
 0x126   : > { %v631_v57 = vcombine.low %v617_v52, %v618_v49  ;;  %v659_v58 = vcombine.low %v645_v53, %v646_v51  ;;  %v837_v59 = vshrl.u32 %v1109_v55, 16  ;;  %v840_v60 = vshll.u32 %v1109_v55, 16  ;;  %v503_v62 = vpop.trf.xlu1 }
 0x127   : > { %v1113_v61 = vpack.c.bf16 %v718_v54, %v717_v56  ;;  %v471_v63 = vpop.trf.xlu0  ;;  %v726_v1 = vmul.f32 %v696_v41, %v503_v62 }
 0x128   : > { %639 = vst [vmem:[%s1457_s30 + $0x10] sm:$0x33] %v631_v57  ;;  %v663_v0 = vrot.slane %v659_v58, 6  ;;  %v725_v2 = vmul.f32 %v692_v42, %v471_v63  ;;  %v839_v3 = vrot.slane %v837_v59, 6  ;;  %v842_v4 = vrot.slane %v840_v60, 7 }
 0x129   : > { %v846_v5 = vshrl.u32 %v1113_v61, 16  ;;  %v849_v7 = vshll.u32 %v1113_v61, 16 }
 0x12a   : > { %671 = vst [vmem:[%s1457_s30 + $0x10] sm:$0xcc] %v663_v0  ;;  %v1117_v8 = vpack.c.bf16 %v726_v1, %v725_v2  ;;  %v843_v9 = vor.u32 %v842_v4, %v839_v3 }
 0x12b   : > { %v848_v10 = vrot.slane %v846_v5, 6  ;;  %v851_v11 = vrot.slane %v849_v7, 7 }
 0x12c   : > { %v894_v12 = vshrl.u32 %v1117_v8, 16  ;;  %v897_v13 = vshll.u32 %v1117_v8, 16  ;;  %v844_v14 = vrot.slane %v843_v9, 4 }
 0x12d   : > { %v852_v15 = vor.u32 %v851_v11, %v848_v10 }
 0x12e   : > { %v896_v16 = vrot.slane %v894_v12, 6  ;;  %v899_v17 = vrot.slane %v897_v13, 7 }
 0x12f   : > { %v853_v18 = vsel %vm1466_vm2, %v844_v14, %v852_v15  ;;  %v892_v19 = vrot.slane %v852_v15, 4 }
 0x130   : > { %922 = vst [vmem:[%s1474_s4 + $0x10] sm:$0xff] %v853_v18  ;;  %v900_v20 = vor.u32 %v899_v17, %v896_v16 }
 0x132   : > { %v901_v21 = vsel %vm1466_vm2, %v892_v19, %v900_v20 }
 0x133   : > { %926 = vst [vmem:[%s1474_s4 + $0x30] sm:$0xff] %v901_v21 }
 0x15e   : > { %v565_v22 = vpop.trf.xlu1 }
 0x15f   : > { %v533_v23 = vpop.trf.xlu0  ;;  %v588_v24 = vmul.f32 0.5, %v565_v22  ;;  %v704_v26 = vrot.slane %v565_v22, %v1446_v6 }
 0x160   : > { %v587_v25 = vmul.f32 0.5, %v533_v23  ;;  %v700_v27 = vrot.slane %v533_v23, %v1446_v6 }
 0x161   : > { %v604_v28 = vrot.slane %v588_v24, 2  ;;  %v712_v30 = vmul.f32 %v704_v26, %v565_v22 }
 0x162   : > { %v603_v29 = vrot.slane %v587_v25, 2  ;;  %v711_v31 = vmul.f32 %v700_v27, %v533_v23  ;;  %v566_v32 = vpop.trf.xlu1 }
 0x163   : > { %v534_v33 = vpop.trf.xlu0  ;;  %v620_v34 = vsub.f32 %v565_v22, %v604_v28  ;;  %v648_v35 = vadd.f32 %v604_v28, %v565_v22  ;;  %v720_v38 = vmul.f32 %v704_v26, %v566_v32 }
 0x164   : > { %v619_v36 = vsub.f32 %v533_v23, %v603_v29  ;;  %v647_v37 = vadd.f32 %v603_v29, %v533_v23  ;;  %v1110_v39 = vpack.c.bf16 %v712_v30, %v711_v31  ;;  %v719_v40 = vmul.f32 %v700_v27, %v534_v33 }
 0x166   : > { %v632_v41 = vcombine.low %v619_v36, %v620_v34  ;;  %v660_v42 = vcombine.low %v647_v37, %v648_v35  ;;  %v855_v6 = vshrl.u32 %v1110_v39, 16  ;;  %v858_v43 = vshll.u32 %v1110_v39, 16  ;;  %v567_v45 = vpop.trf.xlu1 }
 0x167   : > { %v1114_v44 = vpack.c.bf16 %v720_v38, %v719_v40  ;;  %v535_v46 = vpop.trf.xlu0  ;;  %v728_v48 = vmul.f32 %v704_v26, %v567_v45 }
 0x168   : > { %640 = vst [vmem:[%s1457_s30 + $0x18] sm:$0x33] %v632_v41  ;;  %v664_v47 = vrot.slane %v660_v42, 6  ;;  %v727_v49 = vmul.f32 %v700_v27, %v535_v46  ;;  %v857_v51 = vrot.slane %v855_v6, 6  ;;  %v860_v52 = vrot.slane %v858_v43, 7 }
 0x169   : > { %v864_v53 = vshrl.u32 %v1114_v44, 16  ;;  %v867_v54 = vshll.u32 %v1114_v44, 16 }
 0x16a   : > { %672 = vst [vmem:[%s1457_s30 + $0x18] sm:$0xcc] %v664_v47  ;;  %v1118_v55 = vpack.c.bf16 %v728_v48, %v727_v49  ;;  %v861_v56 = vor.u32 %v860_v52, %v857_v51 }
 0x16b   : > { %v866_v57 = vrot.slane %v864_v53, 6  ;;  %v869_v58 = vrot.slane %v867_v54, 7 }
 0x16c   : > { %1197 = shalt.err (!%p1194_p5)
}
 0x16d   : > { %s1198_s25 = scalar_lea.hbm %s1560_s15, 512  ;;  %s1202_s29 = scalar_lea.hbm %s1649_s1, 1024 }
 0x16e   : > { %p1199_p6 = scmp.ne.s32.totalorder %s1560_s15, %s1198_s25  ;;  %p1203_p10 = scmp.lt.u32.totalorder %s1560_s15, %s1649_s1 }
 0x16f   : > { %p1204_p11 = scmp.lt.u32.totalorder %s1202_s29, %s1198_s25  ;;  %p1206_p13 = scmp.lt.u32.totalorder %s1198_s25, %s1560_s15 }
 0x170   : > { %p1200_p7 = pnand %p1199_p6, %p1355_p4 }
 0x171   : > { %p1205_p12 = por %p1204_p11, %p1203_p10 }
 0x172   : > { %p1201_p9 = pneg %p1200_p7 }
 0x173   : > { %p1207_p0 = por %p1206_p13, %p1205_p12 }
 0x175   : > { %p1208_p1 = pnand %p1207_p0, %p1201_p9 }
 0x177   : > { %1211 = shalt.err (!%p1208_p1)
}
 0x178   : > { %1122 = dma.vmem_to_hbm [thread:$0]  (%p1355_p4), %s1562_s6, 512, %s1560_s15, %s929_s16   ;;  %v904_v59 = vshrl.u32 %v1118_v55, 16  ;;  %v907_v60 = vshll.u32 %v1118_v55, 16  ;;  %v862_v61 = vrot.slane %v861_v56, 4  ;;  %v870_v62 = vor.u32 %v869_v58, %v866_v57 }
 0x179   : > { %s1120_s5 = sshll.u32 %s1286_s12, 10  ;;  %s965_s7 = sshll.u32 %s1474_s4, 4  ;;  %s1597_s7 = int_to_ptr.vmem [resolvable:$true] %s965_s7 }
 0x17a   : > { %v906_v63 = vrot.slane %v904_v59, 6  ;;  %v909_v0 = vrot.slane %v907_v60, 7  ;;  %v871_v1 = vsel %vm1466_vm2, %v862_v61, %v870_v62  ;;  %v902_v2 = vrot.slane %v870_v62, 4  ;;  %s1595_s6 = scalar_lea.hbm %s1650_s2, %s1120_s5  ;;  %s934_s12 = scalar_lea.sflag [#allocation5], %s1444_s28 }
 0x17b   : > { %923 = vst [vmem:[%s1474_s4 + $0x18] sm:$0xff] %v871_v1  ;;  %s1212_s15 = scalar_lea.vmem %s1597_s7, 1024  ;;  %s1297_s16 = smov [#allocation4]  }
 0x17c   : > { %v910_v3 = vor.u32 %v909_v0, %v906_v63  ;;  %p1213_p2 = scmp.ne.s32.totalorder %s1597_s7, %s1212_s15  ;;  %s1216_s20 = sshll.u32 %s1297_s16, 4  ;;  %s1217_s20 = int_to_ptr.vmem [resolvable:$false] %s1216_s20 }
 0x17d   : > { %s1218_s23 = scalar_lea.vmem %s1217_s20, 2048  ;;  %p1219_p6 = scmp.lt.s32.totalorder %s1597_s7, %s1217_s20 }
 0x17e   : > { %v911_v4 = vsel %vm1466_vm2, %v902_v2, %v910_v3  ;;  %p1214_p3 = pnand %p1213_p2, %p1355_p4  ;;  %p1220_p7 = scmp.lt.s32.totalorder %s1218_s23, %s1212_s15 }
 0x17f   : > { %927 = vst [vmem:[%s1474_s4 + $0x38] sm:$0xff] %v911_v4 }
 0x180   : > { %p1215_p5 = pneg %p1214_p3  ;;  %p1221_p9 = por %p1220_p7, %p1219_p6 }
 0x182   : > { %p1222_p10 = pnand %p1221_p9, %p1215_p5 }
 0x184   : > { %1225 = shalt.err (!%p1222_p10)
}
 0x185   : > { %s1226_s4 = scalar_lea.hbm %s1595_s6, 1024  ;;  %s1230_s26 = scalar_lea.hbm %s1650_s2, 2048 }
 0x186   : > { %p1227_p11 = scmp.ne.s32.totalorder %s1595_s6, %s1226_s4  ;;  %p1231_p0 = scmp.lt.u32.totalorder %s1595_s6, %s1650_s2 }
 0x187   : > { %p1232_p1 = scmp.lt.u32.totalorder %s1230_s26, %s1226_s4  ;;  %p1234_p3 = scmp.lt.u32.totalorder %s1226_s4, %s1595_s6 }
 0x188   : > { %p1228_p12 = pnand %p1227_p11, %p1355_p4 }
 0x189   : > { %p1233_p2 = por %p1232_p1, %p1231_p0 }
 0x18a   : > { %p1229_p13 = pneg %p1228_p12 }
 0x18b   : > { %p1235_p5 = por %p1234_p3, %p1233_p2 }
 0x18d   : > { %p1236_p6 = pnand %p1235_p5, %p1229_p13 }
 0x18f   : > { %1239 = shalt.err (!%p1236_p6)
}
 0x190   : > { %s1298_s30 = smov 512   ;;  %s1299_s3 = smov 32  }
 0x191   : > { %1123 = dma.vmem_to_hbm [thread:$0]  (%p1355_p4), %s1597_s7, 1024, %s1595_s6, %s934_s12, %s1298_s30, %s1298_s30, %s1299_s3  }
 0x192 PF: > { %p1133_p7 = scmp.ge.s32.totalorder %s1294_s14, 2  ;;  %s980_s5 = sand.u32 1, %s1274_s9  }
 0x193   : > { %s981_s8 = scalar_lea.sflag [#allocation3], %s980_s5 }
 0x194   : > { %p1127_p9 = pnand %p1133_p7, %p1362_p8 }
 0x196   : > { %1265 = dma.done.wait (!%p1127_p9), %s981_s8, 512  }
 0x197   : > { %1267 = vsyncadd (!%p1127_p9), %s981_s8, 4294966784  ;;  %s990_s18 = scalar_lea.sflag [#allocation5], %s980_s5 }
 0x198   : > { %1269 = dma.done.wait (!%p1127_p9), %s990_s18, 1024  }
 0x199   : > { %1271 = vsyncadd (!%p1127_p9), %s990_s18, 4294966272  ;;  %s19_s14 = sadd.s32 1, %s1294_s14   ;;  %s1655_s9 = smov %s1278_s10 }
 0x19a   : > { %p16_p10 = scmp.ge.s32.totalorder %s19_s14, 4   ;;  %s1656_s10 = smov %s1282_s11 }
 0x19b   : > { %s1657_s11 = smov %s1368_s22  ;;  %s1658_s12 = smov %s1290_s13 }
 0x19c   : > { %s1659_s13 = smov %s1661_s17  ;;  %18 = sbr.rel (!%p16_p10) target bundleno = 6 (0x6), region = 76 }
 0x1a3   :  { %995 = vsyncpa [#allocation3], 1 }
 0x1a4   :  { %997 = vsyncpa [#allocation3 + $0x1], 1 }
 0x1a5   :  { %998 = vsyncpa [#allocation5], 1 }
 0x1a6   :  { %1000 = vsyncpa [#allocation5 + $0x1], 1 }

</bundles_post_ra>
